<compile_context>
chip_gen: v5e
topology: v5e:2x2
jax: 0.10.0
libtpu: 0.0.40
codegen_flags: <defaults>
</compile_context>

<pallas_src>
import math

import jax
import jax.numpy as jnp
from jax.experimental import pallas as pl
from jax.experimental.pallas import tpu as pltpu


def _obs_norm_kernel(x_ref, params_ref, o_ref):
    # params_ref: (2, D) f32 — row 0 = scale = 1/stdev, row 1 = shift = -mean/stdev.
    # Cast-on-load is free (VPU cast on data already in vregs).
    x = x_ref[...].astype(jnp.float32)
    scale = params_ref[0:1, :]   # (1, D) broadcast over the batch (sublane) axis
    shift = params_ref[1:2, :]   # (1, D)
    o_ref[...] = (x * scale + shift).astype(o_ref.dtype)


def obs_norm(x, obs_mean, obs_stdev, *, block_batch=None, out_dtype=None):
    """Apply observation normalization: (x - mean) / stdev.

    Args:
      x:          [B, D] (or [D]) observations, any float dtype (cast in-kernel).
      obs_mean:   [D] running mean (float32).
      obs_stdev:  [D] running stdev (float32, nonzero — same contract as PyTorch).
      out_dtype:  output dtype; defaults to x.dtype (halves store traffic for bf16).
    Returns:
      Normalized observations, same shape as x, dtype `out_dtype`.
    """
    squeeze_batch = False
    if x.ndim == 1:
        x = x[None, :]
        squeeze_batch = True
    B, D = x.shape
    assert obs_mean.shape == (D,) and obs_stdev.shape == (D,)
    if out_dtype is None:
        out_dtype = x.dtype

    # Fold the affine transform into one fused (2, D) f32 operand (single tiny DMA).
    scale = 1.0 / obs_stdev.astype(jnp.float32)
    shift = -obs_mean.astype(jnp.float32) * scale
    params = jnp.stack([scale, shift], axis=0)                       # (2, D)

    # Shape plumbing without any HBM pad/slice passes.
    x_in, params_in = x, params
    B_eff, D_eff, k = B, D, 1
    if D % 128 != 0:
        k = 128 // math.gcd(D, 128)          # smallest k with (k*D) % 128 == 0
        if k > 1 and B % k == 0 and B >= k:
            B_eff, D_eff = B // k, k * D
            x_in = x.reshape(B_eff, D_eff)   # contiguous row merge -> free
            params_in = jnp.tile(params, (1, k))   # (2, k*D), a few KB
        else:
            k = 1                            # full-D blocks, masked last lane group

    # Batch tile: per-generation output-byte target, multiple of 8 sublanes,
    # and at least ~4 grid blocks when the batch allows (v7x megacore sharding).
    if block_batch is None:
        try:
            kind = jax.devices()[0].device_kind.lower()
        except Exception:
            kind = ""
        target_tile_bytes = (4 if "v5" in kind else 8) * 1024 * 1024
        out_itemsize = jnp.dtype(out_dtype).itemsize
        bb = max(8, target_tile_bytes // max(1, D_eff * out_itemsize))
        split_cap = max(8, ((pl.cdiv(B_eff, 4) + 7) // 8) * 8)
        bb = min(bb, split_cap)
        bb = max(8, (bb // 8) * 8)
        if B_eff < 8:
            bb = B_eff                       # block dim == full array dim -> legal
        block_batch = int(bb)

    n_blocks = pl.cdiv(B_eff, block_batch)

    # VMEM budget: double-buffered x and out tiles + tiny params tile, ~25% slack.
    in_bytes = block_batch * D_eff * jnp.dtype(x_in.dtype).itemsize
    out_bytes = block_batch * D_eff * jnp.dtype(out_dtype).itemsize
    needed = 2 * (in_bytes + out_bytes) + 2 * 2 * D_eff * 4
    vmem_limit = int(min(max(needed + needed // 4, 16 * 1024 * 1024),
                         48 * 1024 * 1024))

    out = pl.pallas_call(
        _obs_norm_kernel,
        out_shape=jax.ShapeDtypeStruct((B_eff, D_eff), out_dtype),
        grid_spec=pltpu.PrefetchScalarGridSpec(
            num_scalar_prefetch=0,
            grid=(n_blocks,),
            in_specs=[
                # x: tile the batch axis, full obs_dim on lanes (edge blocks masked).
                pl.BlockSpec((block_batch, D_eff), lambda i: (i, 0)),
                # fused scale/shift: same (2, D) tile every grid step.
                pl.BlockSpec((2, D_eff), lambda i: (0, 0)),
            ],
            out_specs=pl.BlockSpec((block_batch, D_eff), lambda i: (i, 0)),
        ),
        compiler_params=pltpu.CompilerParams(
            dimension_semantics=("parallel",),
            vmem_limit_bytes=vmem_limit,
        ),
    )(x_in, params_in)

    if k > 1:
        out = out.reshape(B, D)
    if squeeze_batch:
        out = out[0]
    return out


if __name__ == "__main__":
    # TODO(synk): RunningStat accumulation is init-time state of the PyTorch
    # module (not part of forward), so only the forward normalization is translated.
    key = jax.random.PRNGKey(0)
    kx1, kx2, kx3, km, ks = jax.random.split(key, 5)

    obs_mean = jax.random.normal(km, (128,), dtype=jnp.float32)
    obs_stdev = jax.nn.softplus(jax.random.normal(ks, (128,), dtype=jnp.float32)) + 0.1

    # Case 1: aligned shapes (D multiple of 128), f32 in -> f32 out.
    x1 = jax.random.normal(kx1, (16, 128), dtype=jnp.float32) * 3.0 + 1.5
    out1 = jax.block_until_ready(obs_norm(x1, obs_mean, obs_stdev))
    ref1 = (x1 - obs_mean[None, :]) / obs_stdev[None, :]
    assert out1.shape == (16, 128) and out1.dtype == jnp.float32
    assert jnp.allclose(out1, ref1, rtol=1e-4, atol=1e-4)

    # Case 2: ragged D=96 with B=10 (B % 4 != 0) -> no-pad path with masked
    # last lane group and masked partial batch edge block.
    D2 = 96
    x2 = jax.random.normal(kx2, (10, D2), dtype=jnp.float32) * 2.0 - 0.5
    out2 = jax.block_until_ready(obs_norm(x2, obs_mean[:D2], obs_stdev[:D2]))
    ref2 = (x2 - obs_mean[None, :D2]) / obs_stdev[None, :D2]
    assert out2.shape == (10, D2) and out2.dtype == jnp.float32
    assert jnp.allclose(out2, ref2, rtol=1e-4, atol=1e-4)

    # Case 3: ragged D=96 with B=12 (B % 4 == 0) -> lane-dense row-merge path,
    # bf16 in -> bf16 out (reduced HBM traffic).
    x3 = (jax.random.normal(kx3, (12, D2), dtype=jnp.float32) * 2.0 + 0.5).astype(jnp.bfloat16)
    out3 = jax.block_until_ready(obs_norm(x3, obs_mean[:D2], obs_stdev[:D2]))
    assert out3.shape == (12, D2) and out3.dtype == jnp.bfloat16
    ref3 = (x3.astype(jnp.float32) - obs_mean[None, :D2]) / obs_stdev[None, :D2]
    assert jnp.allclose(out3.astype(jnp.float32), ref3, rtol=3e-2, atol=3e-1)

    print("KERNEL_OK")
</pallas_src>

<mosaic_0001>
module attributes {stable_mosaic.version = 11 : i64} {
  func.func @_obs_norm_kernel(%arg0: i32, %arg1: memref<8x128xf32, #tpu.memory_space<vmem>>, %arg2: memref<2x128xf32, #tpu.memory_space<vmem>>, %arg3: memref<8x128xf32, #tpu.memory_space<vmem>>) attributes {dimension_semantics = [#tpu.dimension_semantics<parallel>], iteration_bounds = array<i64: 2>, scalar_prefetch = 0 : i64, scratch_operands = 0 : i64, tpu.core_type = #tpu.core_type<tc>, window_params = [{transform_indices = @transform_0, window_bounds = array<i64: 8, 128>}, {pipeline_mode = #tpu.pipeline_mode<synchronous>, transform_indices = @transform_1, window_bounds = array<i64: 2, 128>}, {transform_indices = @transform_2, window_bounds = array<i64: 8, 128>}]} {
    %c0 = arith.constant 0 : index
    %c0_0 = arith.constant 0 : index
    %0 = vector.load %arg1[%c0, %c0_0] : memref<8x128xf32, #tpu.memory_space<vmem>>, vector<8x128xf32>
    %c0_1 = arith.constant 0 : index
    %c0_2 = arith.constant 0 : index
    %1 = vector.load %arg2[%c0_1, %c0_2] : memref<2x128xf32, #tpu.memory_space<vmem>>, vector<1x128xf32>
    %c1 = arith.constant 1 : index
    %c0_3 = arith.constant 0 : index
    %2 = vector.load %arg2[%c1, %c0_3] : memref<2x128xf32, #tpu.memory_space<vmem>>, vector<1x128xf32>
    %3 = vector.broadcast %1 : vector<1x128xf32> to vector<8x128xf32>
    %4 = arith.mulf %0, %3 : vector<8x128xf32>
    %5 = vector.broadcast %2 : vector<1x128xf32> to vector<8x128xf32>
    %6 = arith.addf %4, %5 : vector<8x128xf32>
    %c0_4 = arith.constant 0 : index
    %c0_5 = arith.constant 0 : index
    %7 = vector.load %arg3[%c0_4, %c0_5] : memref<8x128xf32, #tpu.memory_space<vmem>>, vector<8x128xf32>
    tpu.vector_store %arg3[%c0_4, %c0_5], %6 {strides = array<i32>} : memref<8x128xf32, #tpu.memory_space<vmem>>, vector<8x128xf32>,
    return
  }
  func.func @transform_0(%arg0: i32) -> (i32, i32) {
    %c0_i32 = arith.constant 0 : i32
    %c0_i32_0 = arith.constant 0 : i32
    return %arg0, %c0_i32 : i32, i32
  }
  func.func @transform_1(%arg0: i32) -> (i32, i32) {
    %c0_i32 = arith.constant 0 : i32
    %c0_i32_0 = arith.constant 0 : i32
    %c0_i32_1 = arith.constant 0 : i32
    return %c0_i32, %c0_i32_0 : i32, i32
  }
  func.func @transform_2(%arg0: i32) -> (i32, i32) {
    %c0_i32 = arith.constant 0 : i32
    %c0_i32_0 = arith.constant 0 : i32
    return %arg0, %c0_i32 : i32, i32
  }
}

</mosaic_0001>

<bundles_post_ra>
// kernel: tpu_custom_call.1
= control target key start
LH: loop header
LB: loop body
LE: loop exit
PB: predicated region body
PF: predicated region fallthrough
CT: control target
= control target key end

     0   :  { %7 = vsyncpa [#allocation3], 0  ;;  %s639_s0 = inlined_call_operand.hbm [shape: f32[16,128], index: 0, kind: input, shape index: {}]   ;;  %s640_s1 = inlined_call_operand.hbm [shape: f32[2,128], index: 1, kind: input, shape index: {}]   ;;  %s641_s2 = inlined_call_operand.hbm [shape: f32[16,128], index: 2, kind: output, shape index: {}]  }
   0x1   :  { %9 = vsyncpa [#allocation3 + $0x1], 0 }
   0x2   :  { %10 = vsyncpa [#allocation6], 0 }
   0x3   :  { %11 = vsyncpa [#allocation4], 0 }
   0x4   :  { %13 = vsyncpa [#allocation4 + $0x1], 0  ;;  %s501_s9 = smov 0   ;;  %s503_s10 = smov 0  }
   0x5   :  { %s505_s11 = smov 0   ;;  %s507_s12 = smov 0  }
   0x6 LB: > { %s522_s13 = sadd.s32 4294967295, %s483_s12   ;;  %s280_s14 = sadd.s32 4294967294, %s483_s12   ;;  %s483_s12 = sphi %s507_s12, %s651_s12   ;;  %s479_s11 = sphi %s505_s11, %s650_s11   ;;  %s475_s10 = sphi %s503_s10, %s649_s10   ;;  %s471_s9 = sphi %s501_s9, %s648_s9  }
   0x7   : > { %p39_p0 = scmp.ne.s32.totalorder %s475_s10, %s471_s9  ;;  %p40_p1 = scmp.eq.s32.totalorder %s522_s13, 0 }
   0x8   : > { %p84_p2 = scmp.eq.s32.totalorder %s522_s13, 1  ;;  %p90_p3 = scmp.eq.s32.totalorder %s280_s14, 1 }
   0x9   : > { %p531_p4 = por %p40_p1, %p39_p0  ;;  %p281_p5 = scmp.ge.s32.totalorder %s483_s12, 1 }
   0xa   : > { %p536_p6 = por %p90_p3, %p39_p0  ;;  %p97_p7 = scmp.lt.s32.totalorder %s483_s12, 3 }
   0xb   : > { %s109_s19 = sshll.u32 %s640_s1, 4  ;;  %s485_s21 = smov [#allocation5]   ;;  %s110_s19 = int_to_ptr.hbm [resolvable:$true] %s109_s19 }
   0xc   : > { %p544_p8 = pnand %p281_p5, %p97_p7  ;;  %s111_s22 = sshll.u32 %s485_s21, 4  ;;  %s112_s22 = int_to_ptr.vmem [resolvable:$true] %s111_s22 }
   0xd   : > { %s554_s23 = sadd.s32 1, %s483_s12   ;;  %s26_s24 = sadd.s32 1, %s479_s11 }
   0xe   : > { %p302_p10 = pneg %p544_p8  ;;  %s23_s25 = ssub.s32 %s483_s12, %s554_s23 }
   0xf   : > { %p24_p12 = scmp.eq.s32.totalorder %s23_s25, 0  ;;  %p33_p13 = scmp.ne.s32.totalorder %s479_s11, %s475_s10 }
  0x10   : > { %p303_p11 = pnand %p302_p10, %p40_p1  ;;  %p34_p0 = scmp.eq.s32.totalorder %s483_s12, 0 }
  0x11   : > { %s563_s26 = scalar_select %p24_p12, %s479_s11, %s26_s24  }
  0x12   : > { %305 = dma.hbm_to_vmem [thread:$0]  (!%p303_p11), %s110_s19, 32, %s112_s22, [#allocation6]  }
  0x13   : > { %p567_p3 = por %p84_p2, %p33_p13  ;;  %p315_p5 = scmp.lt.s32.totalorder %s483_s12, 2 }
  0x14   : > { %s122_s28 = sand.u32 1, %s479_s11   ;;  %s285_s29 = sshll.u32 %s483_s12, 3 }
  0x15   : > { %p35_p7 = por %p34_p0, %p33_p13  ;;  %s284_s30 = sshll.u32 %s122_s28, 3 }
  0x16   : > { %s130_s5 = scalar_lea.hbm %s639_s0, %s285_s29  ;;  %s126_s7 = scalar_lea.vmem [#allocation2], %s284_s30 }
  0x17   : > { %s132_s6 = sshll.u32 %s130_s5, 4  ;;  %s134_s8 = sshll.u32 %s126_s7, 4  ;;  %s133_s6 = int_to_ptr.hbm [resolvable:$true] %s132_s6  ;;  %s135_s8 = int_to_ptr.vmem [resolvable:$true] %s134_s8 }
  0x18   : > { %p577_p10 = pnand %p315_p5, %p35_p7  ;;  %s123_s17 = scalar_lea.sflag [#allocation3], %s122_s28 }
  0x19   : > { %s383_s18 = sshra.s32 %s133_s6, 4  ;;  %s390_s24 = scalar_lea.hbm %s639_s0, 16  ;;  %s384_s18 = int_to_ptr.hbm [resolvable:$true] %s383_s18 }
  0x1a   : > { %s385_s19 = scalar_lea.hbm %s384_s18, 8  ;;  %p387_p11 = pneg %p577_p10 }
  0x1b   : > { %p386_p2 = scmp.ne.s32.totalorder %s384_s18, %s385_s19  ;;  %p391_p0 = scmp.lt.s32.totalorder %s384_s18, %s639_s0 }
  0x1c   : > { %p392_p5 = scmp.lt.s32.totalorder %s390_s24, %s385_s19 }
  0x1d   : > { %p388_p12 = pnand %p387_p11, %p386_p2 }
  0x1e   : > { %p393_p7 = por %p392_p5, %p391_p0 }
  0x1f   : > { %p389_p13 = pneg %p388_p12 }
  0x21   : > { %p394_p9 = pnand %p393_p7, %p389_p13 }
  0x23   : > { %397 = shalt.err (!%p394_p9)
}
  0x24   : > { %309 = dma.hbm_to_vmem [thread:$0]  (!%p577_p10), %s133_s6, 128, %s135_s8, %s123_s17  }
  0x25   : > { %143 = sbr.rel (%p544_p8) target bundleno = 60 (0x3c), region = 28  ;;  %s594_s28 = sand.u32 (!%p544_p8), 1, %s475_s10  }
  0x26   : > { %s287_s30 = sshll.u32 (!%p544_p8), %s594_s28, 3  ;;  %s146_s3 = scalar_lea.sflag (!%p544_p8), [#allocation3], %s594_s28 }
  0x27   : > { %s149_s4 = scalar_lea.vmem (!%p544_p8), [#allocation2], %s287_s30 }
  0x2a   : > { %458 = dma.done.wait (%p531_p4), %s146_s3, 128  }
  0x2b   : > { %460 = vsyncadd (%p531_p4), %s146_s3, 4294967168 }
  0x2c   : > { %462 = dma.done.wait (%p40_p1), [#allocation6], 32  }
  0x2d   : > { %464 = vsyncadd (%p40_p1), [#allocation6], 4294967264  ;;  %s291_s20 = sshll.u32 %s522_s13, 3  ;;  %v176_v0 = vld [vmem:[%s149_s4] sm:$0xff]  ;;  %v351_v1 = vld [vmem:[#allocation5] ss:$0 sm:$0xff] }
  0x2e   : > { %s195_s7 = scalar_lea.hbm %s641_s2, %s291_s20  ;;  %v352_v2 = vld [vmem:[#allocation5 + $0x1] ss:$0 sm:$0xff]  ;;  %s175_s8 = scalar_lea.vmem [#allocation7], %s287_s30  ;;  %v180_v3 = vmul.f32 %v351_v1, %v176_v0 }
  0x2f   : > { %s197_s15 = sshll.u32 %s175_s8, 4  ;;  %s199_s14 = sshll.u32 %s195_s7, 4  ;;  %s198_s15 = int_to_ptr.vmem [resolvable:$true] %s197_s15  ;;  %s200_s14 = int_to_ptr.hbm [resolvable:$true] %s199_s14 }
  0x30   : > { %v182_v4 = vadd.f32 %v352_v2, %v180_v3  ;;  %s185_s17 = scalar_lea.sflag [#allocation4], %s594_s28  ;;  %s427_s18 = sshra.s32 %s200_s14, 4  ;;  %s428_s18 = int_to_ptr.hbm [resolvable:$true] %s427_s18 }
  0x31   : > { %s429_s13 = scalar_lea.hbm %s428_s18, 8  ;;  %s433_s22 = scalar_lea.hbm %s641_s2, 16 }
  0x32   : > { %183 = vst [vmem:[%s175_s8] sm:$0xff] %v182_v4  ;;  %p430_p1 = scmp.ne.s32.totalorder %s428_s18, %s429_s13  ;;  %p434_p9 = scmp.lt.s32.totalorder %s428_s18, %s641_s2 }
  0x33   : > { %p435_p10 = scmp.lt.s32.totalorder %s433_s22, %s429_s13 }
  0x34   : > { %p431_p4 = pnand %p430_p1, %p567_p3 }
  0x35   : > { %p436_p2 = por %p435_p10, %p434_p9 }
  0x36   : > { %p432_p8 = pneg %p431_p4 }
  0x38   : > { %p437_p11 = pnand %p436_p2, %p432_p8 }
  0x3a   : > { %440 = shalt.err (!%p437_p11)
}
  0x3b   : > { %300 = dma.vmem_to_hbm [thread:$0]  (%p567_p3), %s198_s15, 128, %s200_s14, %s185_s17  }
  0x3c PF: > { %s211_s29 = sand.u32 1, %s471_s9   ;;  %p647_p12 = scmp.ge.s32.totalorder %s483_s12, 2 }
  0x3d   : > { %s212_s28 = scalar_lea.sflag [#allocation4], %s211_s29 }
  0x3e   : > { %p311_p13 = pnand %p647_p12, %p536_p6 }
  0x40   : > { %p312_p0 = pneg %p311_p13 }
  0x42   : > { %466 = dma.done.wait (%p312_p0), %s212_s28, 128  }
  0x43   : > { %468 = vsyncadd (%p312_p0), %s212_s28, 4294967168  ;;  %p16_p5 = scmp.ge.s32.totalorder %s554_s23, 4   ;;  %s648_s9 = smov %s475_s10 }
  0x44   : > { %s649_s10 = smov %s479_s11  ;;  %s650_s11 = smov %s563_s26 }
  0x45   : > { %s651_s12 = smov %s554_s23  ;;  %18 = sbr.rel (!%p16_p5) target bundleno = 6 (0x6), region = 77 }
  0x4a   :  { %218 = vsyncpa [#allocation3], 1 }
  0x4b   :  { %220 = vsyncpa [#allocation3 + $0x1], 1 }
  0x4c   :  { %221 = vsyncpa [#allocation6], 1 }
  0x4d   :  { %222 = vsyncpa [#allocation4], 1 }
  0x4e   :  { %224 = vsyncpa [#allocation4 + $0x1], 1 }

</bundles_post_ra>
